<compile_context>
chip_gen: v5e
topology: v5e:2x2
jax: 0.10.0
libtpu: 0.0.40
codegen_flags: <defaults>
</compile_context>

<pallas_src>
import jax
import jax.numpy as jnp
from jax.experimental import pallas as pl
from jax.experimental.pallas import tpu as pltpu


def _relpos_concat_kernel(x_ref, pos_ref, o_ref):
    """Per grid step: o[b, s, :C] = x[b, s];  o[b, s, C:] = pos[s]."""
    c_in = x_ref.shape[-1]
    # Lane-aligned slab store of the input half of the output block.
    o_ref[:, :, :c_in] = x_ref[...].astype(o_ref.dtype)
    # Positional rows (S, E) broadcast across the batch block and stored once.
    pos = pos_ref[...].astype(o_ref.dtype)
    o_ref[:, :, c_in:] = jnp.broadcast_to(pos[None, :, :],
                                          (x_ref.shape[0],) + pos.shape)


def relative_positional_encoding(x, embedding_table, *, block_b=None,
                                 vmem_budget_bytes=8 * 1024 * 1024):
    """x: (B, S, C), embedding_table: (V, E) -> (B, S, C + E)."""
    B, S, C = x.shape
    V, E = embedding_table.shape
    if S > V:
        raise ValueError(f"seq_len={S} exceeds embedding rows num_channels={V}")

    # positions[i, j] == j  =>  embedding(positions)[i] == table[:S]  (row slice, no gather).
    pos = jax.lax.slice(embedding_table, (0, 0), (S, E))

    itemsize = jnp.dtype(x.dtype).itemsize
    # Per-batch-element VMEM footprint (input tile + output tile), double buffered.
    bytes_per_b = (S * C + S * (C + E)) * itemsize * 2
    if block_b is None:
        block_b = max(1, min(B, vmem_budget_bytes // max(1, bytes_per_b)))
        # Keep >= 2 grid steps when possible so v7x's two TensorCores both get work.
        if B >= 2 and block_b >= B:
            block_b = (B + 1) // 2
    Bp = ((B + block_b - 1) // block_b) * block_b
    xp = jnp.pad(x, ((0, Bp - B), (0, 0), (0, 0))) if Bp != B else x

    out = pl.pallas_call(
        _relpos_concat_kernel,
        out_shape=jax.ShapeDtypeStruct((Bp, S, C + E), x.dtype),
        grid=(Bp // block_b,),
        in_specs=[
            pl.BlockSpec((block_b, S, C), lambda i: (i, 0, 0)),
            pl.BlockSpec((S, E), lambda i: (0, 0)),
        ],
        out_specs=pl.BlockSpec((block_b, S, C + E), lambda i: (i, 0, 0)),
        compiler_params=pltpu.CompilerParams(dimension_semantics=("parallel",)),
        cost_estimate=pl.CostEstimate(
            flops=0,
            transcendentals=0,
            bytes_accessed=(Bp * S * C + S * E + Bp * S * (C + E)) * itemsize,
        ),
    )(xp, pos)
    return out[:B] if Bp != B else out


if __name__ == "__main__":
    # Small shapes consistent with the module: nn.Embedding(num_channels, num_channels),
    # seq_len <= num_channels, and batch == seq_len (required by the reference torch.cat).
    num_channels = 128
    batch = 8
    seq_len = 8

    key = jax.random.PRNGKey(0)
    kx, kt = jax.random.split(key)
    x = jax.random.normal(kx, (batch, seq_len, num_channels), dtype=jnp.float32)
    table = (0.02 * jax.random.normal(kt, (num_channels, num_channels))).astype(jnp.float32)

    out = jax.block_until_ready(relative_positional_encoding(x, table))

    # Pure-JAX reference mirroring the PyTorch forward (batch == seq_len case).
    positions = jnp.broadcast_to(jnp.arange(seq_len)[None, :], (seq_len, seq_len))
    ref = jnp.concatenate([x, table[positions]], axis=-1)

    assert out.shape == (batch, seq_len, 2 * num_channels)
    assert bool(jnp.all(jnp.isfinite(out)))
    assert bool(jnp.allclose(out, ref))
    print("KERNEL_OK")
</pallas_src>

<mosaic_0001>
module attributes {stable_mosaic.version = 11 : i64} {
  func.func @_relpos_concat_kernel(%arg0: i32, %arg1: memref<4x8x128xf32, #tpu.memory_space<vmem>>, %arg2: memref<8x128xf32, #tpu.memory_space<vmem>>, %arg3: memref<4x8x256xf32, #tpu.memory_space<vmem>>) attributes {dimension_semantics = [#tpu.dimension_semantics<parallel>], iteration_bounds = array<i64: 2>, scalar_prefetch = 0 : i64, scratch_operands = 0 : i64, tpu.core_type = #tpu.core_type<tc>, window_params = [{transform_indices = @transform_0, window_bounds = array<i64: 4, 8, 128>}, {pipeline_mode = #tpu.pipeline_mode<synchronous>, transform_indices = @transform_1, window_bounds = array<i64: 8, 128>}, {transform_indices = @transform_2, window_bounds = array<i64: 4, 8, 256>}]} {
    %c0 = arith.constant 0 : index
    %c0_0 = arith.constant 0 : index
    %c0_1 = arith.constant 0 : index
    %0 = vector.load %arg1[%c0, %c0_0, %c0_1] : memref<4x8x128xf32, #tpu.memory_space<vmem>>, vector<4x8x128xf32>
    %c0_2 = arith.constant 0 : index
    %c0_3 = arith.constant 0 : index
    %c0_4 = arith.constant 0 : index
    %1 = vector.load %arg3[%c0_2, %c0_3, %c0_4] : memref<4x8x256xf32, #tpu.memory_space<vmem>>, vector<4x8x128xf32>
    tpu.vector_store %arg3[%c0_2, %c0_3, %c0_4], %0 {strides = array<i32>} : memref<4x8x256xf32, #tpu.memory_space<vmem>>, vector<4x8x128xf32>,
    %c0_5 = arith.constant 0 : index
    %c0_6 = arith.constant 0 : index
    %2 = vector.load %arg2[%c0_5, %c0_6] : memref<8x128xf32, #tpu.memory_space<vmem>>, vector<8x128xf32>
    %3 = vector.shape_cast %2 : vector<8x128xf32> to vector<1x8x128xf32>
    %4 = vector.shape_cast %3 : vector<1x8x128xf32> to vector<1x8x128xf32>
    %5 = vector.broadcast %4 : vector<1x8x128xf32> to vector<4x8x128xf32>
    %c0_7 = arith.constant 0 : index
    %c0_8 = arith.constant 0 : index
    %c128 = arith.constant 128 : index
    %6 = vector.load %arg3[%c0_7, %c0_8, %c128] : memref<4x8x256xf32, #tpu.memory_space<vmem>>, vector<4x8x128xf32>
    tpu.vector_store %arg3[%c0_7, %c0_8, %c128], %5 {strides = array<i32>} : memref<4x8x256xf32, #tpu.memory_space<vmem>>, vector<4x8x128xf32>,
    return
  }
  func.func @transform_0(%arg0: i32) -> (i32, i32, i32) {
    %c0_i32 = arith.constant 0 : i32
    %c0_i32_0 = arith.constant 0 : i32
    %c0_i32_1 = arith.constant 0 : i32
    return %arg0, %c0_i32, %c0_i32_0 : i32, i32, i32
  }
  func.func @transform_1(%arg0: i32) -> (i32, i32) {
    %c0_i32 = arith.constant 0 : i32
    %c0_i32_0 = arith.constant 0 : i32
    %c0_i32_1 = arith.constant 0 : i32
    return %c0_i32, %c0_i32_0 : i32, i32
  }
  func.func @transform_2(%arg0: i32) -> (i32, i32, i32) {
    %c0_i32 = arith.constant 0 : i32
    %c0_i32_0 = arith.constant 0 : i32
    %c0_i32_1 = arith.constant 0 : i32
    return %arg0, %c0_i32, %c0_i32_0 : i32, i32, i32
  }
}

</mosaic_0001>

<bundles_post_ra>
// kernel: tpu_custom_call.1
= control target key start
LH: loop header
LB: loop body
LE: loop exit
PB: predicated region body
PF: predicated region fallthrough
CT: control target
= control target key end

     0   :  { %7 = vsyncpa [#allocation3], 0  ;;  %s670_s0 = inlined_call_operand.hbm [shape: f32[8,8,128], index: 0, kind: input, shape index: {}]   ;;  %s671_s1 = inlined_call_operand.hbm [shape: f32[8,128], index: 1, kind: input, shape index: {}]   ;;  %s672_s2 = inlined_call_operand.hbm [shape: f32[8,8,256], index: 2, kind: output, shape index: {}]  }
   0x1   :  { %9 = vsyncpa [#allocation3 + $0x1], 0 }
   0x2   :  { %10 = vsyncpa [#allocation6], 0 }
   0x3   :  { %11 = vsyncpa [#allocation4], 0 }
   0x4   :  { %13 = vsyncpa [#allocation4 + $0x1], 0  ;;  %s527_s9 = smov 0   ;;  %s529_s10 = smov 0  }
   0x5   :  { %s531_s11 = smov 0   ;;  %s533_s12 = smov 0  }
   0x6 LB: > { %s548_s13 = sadd.s32 4294967295, %s505_s12   ;;  %s294_s14 = sadd.s32 4294967294, %s505_s12   ;;  %s505_s12 = sphi %s533_s12, %s683_s12   ;;  %s501_s11 = sphi %s531_s11, %s682_s11   ;;  %s497_s10 = sphi %s529_s10, %s681_s10   ;;  %s493_s9 = sphi %s527_s9, %s680_s9  }
   0x7   : > { %s552_s15 = sadd.s32 1, %s505_s12   ;;  %s26_s16 = sadd.s32 1, %s501_s11 }
   0x8   : > { %s23_s17 = ssub.s32 %s505_s12, %s552_s15  ;;  %p33_p0 = scmp.ne.s32.totalorder %s501_s11, %s497_s10 }
   0x9   : > { %p24_p1 = scmp.eq.s32.totalorder %s23_s17, 0  ;;  %p34_p2 = scmp.eq.s32.totalorder %s505_s12, 0 }
   0xa   : > { %p39_p3 = scmp.ne.s32.totalorder %s497_s10, %s493_s9  ;;  %p40_p4 = scmp.eq.s32.totalorder %s548_s13, 0 }
   0xb   : > { %s564_s18 = scalar_select %p24_p1, %s501_s11, %s26_s16  }
   0xc   : > { %p566_p5 = por %p34_p2, %p33_p0  ;;  %p572_p6 = por %p40_p4, %p39_p3 }
   0xd   : > { %p84_p7 = scmp.eq.s32.totalorder %s548_s13, 1  ;;  %p90_p8 = scmp.eq.s32.totalorder %s294_s14, 1 }
   0xe   : > { %p295_p9 = scmp.ge.s32.totalorder %s505_s12, 1  ;;  %p97_p10 = scmp.lt.s32.totalorder %s505_s12, 3 }
   0xf   : > { %p579_p11 = por %p84_p7, %p33_p0  ;;  %p583_p12 = por %p90_p8, %p39_p3 }
  0x10   : > { %p587_p13 = pnand %p295_p9, %p97_p10  ;;  %s109_s26 = sshll.u32 %s671_s1, 4  ;;  %s110_s26 = int_to_ptr.hbm [resolvable:$true] %s109_s26 }
  0x11   : > { %s507_s27 = smov [#allocation5]   ;;  %p335_p3 = scmp.lt.s32.totalorder %s505_s12, 2 }
  0x12   : > { %p322_p1 = pneg %p587_p13  ;;  %s111_s28 = sshll.u32 %s507_s27, 4  ;;  %s112_s28 = int_to_ptr.vmem [resolvable:$true] %s111_s28 }
  0x13   : > { %s122_s29 = sand.u32 1, %s501_s11   ;;  %p603_p7 = pnand %p335_p3, %p566_p5 }
  0x14   : > { %p323_p2 = pnand %p322_p1, %p40_p4  ;;  %s298_s3 = sshll.u32 %s122_s29, 5 }
  0x15   : > { %s311_s4 = sshll.u32 %s505_s12, 5  ;;  %s126_s14 = scalar_lea.vmem [#allocation2], %s298_s3 }
  0x16   : > { %325 = dma.hbm_to_vmem [thread:$0]  (!%p323_p2), %s110_s26, 128, %s112_s28, [#allocation6]  }
  0x17   : > { %s131_s7 = scalar_lea.hbm %s670_s0, %s311_s4  ;;  %s134_s16 = sshll.u32 %s126_s14, 4  ;;  %s135_s16 = int_to_ptr.vmem [resolvable:$true] %s134_s16 }
  0x18   : > { %s132_s8 = sshll.u32 %s131_s7, 4  ;;  %s123_s17 = scalar_lea.sflag [#allocation3], %s122_s29  ;;  %s133_s8 = int_to_ptr.hbm [resolvable:$true] %s132_s8 }
  0x19   : > { %s405_s24 = sshra.s32 %s133_s8, 4  ;;  %p409_p8 = pneg %p603_p7  ;;  %s406_s24 = int_to_ptr.hbm [resolvable:$true] %s405_s24 }
  0x1a   : > { %s407_s19 = scalar_lea.hbm %s406_s24, 32  ;;  %s412_s27 = scalar_lea.hbm %s670_s0, 64 }
  0x1b   : > { %p408_p5 = scmp.ne.s32.totalorder %s406_s24, %s407_s19  ;;  %p413_p1 = scmp.lt.s32.totalorder %s406_s24, %s670_s0 }
  0x1c   : > { %p414_p2 = scmp.lt.s32.totalorder %s412_s27, %s407_s19 }
  0x1d   : > { %p410_p9 = pnand %p409_p8, %p408_p5 }
  0x1e   : > { %p415_p3 = por %p414_p2, %p413_p1 }
  0x1f   : > { %p411_p10 = pneg %p410_p9 }
  0x21   : > { %p416_p0 = pnand %p415_p3, %p411_p10 }
  0x23   : > { %419 = shalt.err (!%p416_p0)
}
  0x24   : > { %s508_s29 = smov 128   ;;  %s509_s3 = smov 8  }
  0x25   : > { %329 = dma.hbm_to_vmem [thread:$0]  (!%p603_p7), %s133_s8, 512, %s135_s16, %s123_s17, %s508_s29, %s508_s29, %s509_s3  }
  0x26   : > { %146 = sbr.rel (%p587_p13) target bundleno = 62 (0x3e), region = 28  ;;  %s624_s5 = sand.u32 (!%p587_p13), 1, %s497_s10  }
  0x27   : > { %s302_s6 = sshll.u32 (!%p587_p13), %s624_s5, 5  ;;  %s149_s7 = scalar_lea.sflag (!%p587_p13), [#allocation3], %s624_s5 }
  0x28   : > { %s152_s14 = scalar_lea.vmem (!%p587_p13), [#allocation2], %s302_s6 }
  0x2b   : > { %480 = dma.done.wait (%p572_p6), %s149_s7, 512  }
  0x2c   : > { %482 = vsyncadd (%p572_p6), %s149_s7, 4294966784 }
  0x2d   : > { %484 = dma.done.wait (%p40_p4), [#allocation6], 128  }
  0x2e   : > { %486 = vsyncadd (%p40_p4), [#allocation6], 4294967168  ;;  %s304_s23 = sshll.u32 %s624_s5, 6  ;;  %s313_s30 = sshll.u32 %s548_s13, 6  ;;  %v181_v0 = vld [vmem:[%s152_s14] sm:$0xff]  ;;  %v182_v1 = vld [vmem:[%s152_s14 + $0x8] sm:$0xff] }
  0x2f   : > { %s207_s17 = scalar_lea.hbm %s672_s2, %s313_s30  ;;  %v183_v2 = vld [vmem:[%s152_s14 + $0x10] sm:$0xff]  ;;  %s178_s20 = scalar_lea.vmem [#allocation7], %s304_s23  ;;  %v184_v3 = vld [vmem:[%s152_s14 + $0x18] sm:$0xff]  ;;  %v189_v4 = vld [vmem:[#allocation5] sm:$0xff] }
  0x30   : > { %185 = vst [vmem:[%s178_s20] sm:$0xff] %v181_v0  ;;  %s208_s24 = sshll.u32 %s178_s20, 4  ;;  %s210_s19 = sshll.u32 %s207_s17, 4  ;;  %s209_s24 = int_to_ptr.vmem [resolvable:$true] %s208_s24  ;;  %s211_s19 = int_to_ptr.hbm [resolvable:$true] %s210_s19 }
  0x31   : > { %186 = vst [vmem:[%s178_s20 + $0x10] sm:$0xff] %v182_v1  ;;  %s195_s13 = scalar_lea.sflag [#allocation4], %s624_s5  ;;  %s449_s25 = sshra.s32 %s211_s19, 4  ;;  %s450_s25 = int_to_ptr.hbm [resolvable:$true] %s449_s25 }
  0x32   : > { %187 = vst [vmem:[%s178_s20 + $0x20] sm:$0xff] %v183_v2  ;;  %s451_s26 = scalar_lea.hbm %s450_s25, 64  ;;  %s455_s4 = scalar_lea.hbm %s672_s2, 128 }
  0x33   : > { %188 = vst [vmem:[%s178_s20 + $0x30] sm:$0xff] %v184_v3  ;;  %p452_p4 = scmp.ne.s32.totalorder %s450_s25, %s451_s26  ;;  %p456_p0 = scmp.lt.s32.totalorder %s450_s25, %s672_s2 }
  0x34   : > { %190 = vst [vmem:[%s178_s20 + $0x8] sm:$0xff] %v189_v4  ;;  %p457_p7 = scmp.lt.s32.totalorder %s455_s4, %s451_s26 }
  0x35   : > { %191 = vst [vmem:[%s178_s20 + $0x18] sm:$0xff] %v189_v4  ;;  %p453_p6 = pnand %p452_p4, %p579_p11 }
  0x36   : > { %192 = vst [vmem:[%s178_s20 + $0x28] sm:$0xff] %v189_v4  ;;  %p458_p5 = por %p457_p7, %p456_p0 }
  0x37   : > { %193 = vst [vmem:[%s178_s20 + $0x38] sm:$0xff] %v189_v4  ;;  %p454_p13 = pneg %p453_p6 }
  0x39   : > { %p459_p8 = pnand %p458_p5, %p454_p13 }
  0x3b   : > { %462 = shalt.err (!%p459_p8)
}
  0x3c   : > { %s510_s5 = smov 256   ;;  %s511_s6 = smov 16  }
  0x3d   : > { %320 = dma.vmem_to_hbm [thread:$0]  (%p579_p11), %s209_s24, 1024, %s211_s19, %s195_s13, %s510_s5, %s510_s5, %s511_s6  }
  0x3e PF: > { %s225_s7 = sand.u32 1, %s493_s9   ;;  %p679_p9 = scmp.ge.s32.totalorder %s505_s12, 2 }
  0x3f   : > { %s226_s14 = scalar_lea.sflag [#allocation4], %s225_s7 }
  0x40   : > { %p331_p10 = pnand %p679_p9, %p583_p12 }
  0x42   : > { %p332_p1 = pneg %p331_p10 }
  0x44   : > { %488 = dma.done.wait (%p332_p1), %s226_s14, 1024  }
  0x45   : > { %490 = vsyncadd (%p332_p1), %s226_s14, 4294966272  ;;  %p16_p2 = scmp.ge.s32.totalorder %s552_s15, 4   ;;  %s680_s9 = smov %s497_s10 }
  0x46   : > { %s681_s10 = smov %s501_s11  ;;  %s682_s11 = smov %s564_s18 }
  0x47   : > { %s683_s12 = smov %s552_s15  ;;  %18 = sbr.rel (!%p16_p2) target bundleno = 6 (0x6), region = 77 }
  0x4c   :  { %232 = vsyncpa [#allocation3], 1 }
  0x4d   :  { %234 = vsyncpa [#allocation3 + $0x1], 1 }
  0x4e   :  { %235 = vsyncpa [#allocation6], 1 }
  0x4f   :  { %236 = vsyncpa [#allocation4], 1 }
  0x50   :  { %238 = vsyncpa [#allocation4 + $0x1], 1 }

</bundles_post_ra>
